<compile_context>
chip_gen: v6e
topology: v6e:2x2x1
jax: 0.10.0
libtpu: 0.0.40
codegen_flags: <defaults>
</compile_context>

<pallas_src>
import functools

import jax
import jax.numpy as jnp
import numpy as np
from jax.experimental import pallas as pl
from jax.experimental.pallas import tpu as pltpu

HIDDEN = 32          # constant.hidden_size
STATE_NUM = 5        # constant.state_num
BATCH = 2
MAX_CONV_LEN = 8     # max_conversation_length
MAX_SESSION_LEN = 8  # positions addressable by state_transition_matrix


def _state_matrix_kernel(lhs_ref,    # VMEM (2*B*L, B*K) f32: rows 0:B*L gather one-hots,
                                     #                        rows B*L:   pooled-static coeffs
                         rhs_ref,    # VMEM (B*K, S*H) f32:  cols 0:(S-1)*H block-diag session,
                                     #                        cols (S-1)*H: flat session
                         misc_ref,   # VMEM (B*L+1, 2H) f32: rows 0:B*L [conv_shift | cneg],
                                     #                        row  B*L   [bias | 0]
                         w_ref,      # VMEM (2H, H) f32: stacked Linear weight (x @ W form)
                         out_ref,    # VMEM (B*L, S*H) f32: cols 0:H -> j=0, cols j*H -> state j
                         *, B, L, S, H):
    w = w_ref[...]                     # (2H, H)
    w1 = w[:H, :]                      # (H, H)  one_res half, reused by the recurrence
    misc = misc_ref[...]
    conv = misc[:B * L, :H]            # (B*L, H) shifted conversation state
    cneg = misc[:B * L, H:]            # (B*L, H) recurrence coefficient (broadcast over lanes)
    bias = misc[B * L:, :H]            # (1, H)

    # ---- one fused MXU pass: gather slab (lane-dense) + pooled static sums ------
    big = jnp.dot(lhs_ref[...], rhs_ref[...], preferred_element_type=jnp.float32)  # (2BL, S*H)
    gathered = big[:B * L, :(S - 1) * H]        # (B*L, (S-1)*H)   every j>=1 output slot
    static_sum = big[B * L:, (S - 1) * H:]      # (B*L, H)         stm-static part of one_res

    # ---- one fused base projection (register-resident, no scratch) ---------------
    base = jnp.dot(jnp.concatenate([static_sum, conv], axis=-1), w,
                   preferred_element_type=jnp.float32) + bias                       # (B*L, H)
    base3 = base.reshape(B, L, H)
    cneg3 = cneg.reshape(B, L, H)

    # ---- serial recurrence over conversation position (the only critical path) ---
    #   proj_l = relu(base_l + c_l * (proj_{l-1} @ W1)); carry stays in registers.
    # TODO(synk): latch W1 in MXU weight regs (matmul_push_rhs/acc_lhs) if the
    #             bundle dump shows repeated weight pushes; bf16 carry is opt-in.
    proj_prev = jnp.zeros((B, H), jnp.float32)
    projs = []
    for l in range(L):
        prev_term = jnp.dot(proj_prev, w1, preferred_element_type=jnp.float32)      # (B, H)
        proj = jnp.maximum(base3[:, l, :] + cneg3[:, l, :] * prev_term, 0.0)
        projs.append(proj)
        proj_prev = proj
    proj_all = jnp.stack(projs, axis=1).reshape(B * L, H)                            # rows (b, l)

    # ---- single lane-dense store of the whole output slab ------------------------
    out_ref[...] = jnp.concatenate([proj_all, gathered], axis=-1)                    # (B*L, S*H)


def state_matrix_encoder_forward(utterance_repre, conversation_repre, session_repre,
                                 state_transition_matrix, max_conversation_length,
                                 w, bias):
    B, _, H = utterance_repre.shape
    L = int(max_conversation_length)
    S = STATE_NUM
    P = session_repre.shape[2]
    K = (S - 1) * P
    f32 = jnp.float32
    stm = state_transition_matrix.astype(jnp.int32)                   # (B, L, S)

    # ---------- tiny stm-dependent plumbing (vectorized, wrapper-side) ------------
    # TODO(synk): out-of-range stm codes (> P) are silently treated as "no gather";
    #             PyTorch would raise an IndexError instead.
    valid = (stm >= 1) & (stm <= P)
    col = jnp.arange(K, dtype=jnp.int32)
    src_block = (jnp.arange(S, dtype=jnp.int32) - 1) % (S - 1)         # j==0 -> S-2 (torch j-1 == -1)
    tgt = src_block[None, None, :] * P + stm - 1                       # (B, L, S)
    onehot = (valid[..., None] &
              (col[None, None, None, :] == tgt[..., None])).astype(f32)    # (B, L, S, K)

    # AvgPool2d((S-1,1)) over appended rows == mean of the FIRST S-1 appended rows.
    # TODO(synk): if fewer than S-1 rows are appended PyTorch raises; here we still
    #             divide by (S-1) (only diverges on inputs torch rejects).
    appended = stm != 0
    cum_excl = jnp.cumsum(appended.astype(jnp.int32), axis=-1) - appended.astype(jnp.int32)
    w_pool = (appended & (cum_excl < S - 1)).astype(f32) * (1.0 / (S - 1))   # (B, L, S)

    wpos = w_pool * (stm > 0).astype(f32)                              # appended gathered values
    wprev = w_pool * (stm == -1).astype(f32)                           # appended previous-row values
    wprev = wprev.at[:, :, 0].set(0.0)                                 # j==0 prev value -> recurrence
    onehot_prev = jnp.concatenate(
        [jnp.zeros_like(onehot[:, :1]), onehot[:, :-1]], axis=1)       # row i-1 (zeros for i==0)

    a_static = (jnp.einsum('blj,bljk->blk', wpos, onehot)
                + jnp.einsum('blj,bljk->blk', wprev, onehot_prev))     # (B, L, K)
    c_rec = w_pool[:, :, 0] * (stm[:, :, 0] == -1).astype(f32)         # (B, L)

    gather_bl = onehot[:, :, 1:, :].sum(axis=2)                        # (B, L, K)  j>=1 one-hots

    # ---------- fused kernel operands (block-diagonal over batch / over j) --------
    eye_b = jnp.eye(B, dtype=f32)
    gather_lhs = (gather_bl[:, :, None, :] * eye_b[:, None, :, None]).reshape(B * L, B * K)
    a_static_lhs = (a_static[:, :, None, :] * eye_b[:, None, :, None]).reshape(B * L, B * K)
    lhs = jnp.concatenate([gather_lhs, a_static_lhs], axis=0)          # (2*B*L, B*K)

    sess = session_repre.astype(f32)                                   # (B, S-1, P, H)
    eye_j = jnp.eye(S - 1, dtype=f32)
    rhs_bd = (sess[:, :, :, None, :] * eye_j[None, :, None, :, None]
              ).reshape(B * K, (S - 1) * H)                            # block-diag over j
    sess_flat = sess.reshape(B * K, H)
    rhs = jnp.concatenate([rhs_bd, sess_flat], axis=1)                 # (B*K, S*H)

    conv_shift = jnp.concatenate(
        [conversation_repre[:, :1], conversation_repre[:, :L - 1]], axis=1
    ).astype(f32).reshape(B * L, H)                                    # rows (b, l)
    cneg = jnp.broadcast_to(c_rec.reshape(B * L, 1), (B * L, H)).astype(f32)
    bias_row = jnp.concatenate([bias.reshape(1, H).astype(f32),
                                jnp.zeros((1, H), f32)], axis=1)
    misc = jnp.concatenate(
        [jnp.concatenate([conv_shift, cneg], axis=1), bias_row], axis=0)   # (B*L+1, 2H)

    w_full = w.astype(f32)                                             # (2H, H)

    kernel = functools.partial(_state_matrix_kernel, B=B, L=L, S=S, H=H)
    out = pl.pallas_call(
        kernel,
        out_shape=jax.ShapeDtypeStruct((B * L, S * H), jnp.float32),
        in_specs=[pl.BlockSpec(memory_space=pltpu.MemorySpace.VMEM)] * 4,
        out_specs=pl.BlockSpec(memory_space=pltpu.MemorySpace.VMEM),
    )(lhs, rhs, misc, w_full)

    return out.reshape(B, L, S, H)                                     # (B, L, S, H)


def reference_forward(session, conv, stm, w, bias):
    """Pure-numpy line-by-line replica of the PyTorch build_state_matrix."""
    B, Sm1, P, H = session.shape
    S = Sm1 + 1
    L = conv.shape[1]
    out = np.zeros((B, L, S, H), np.float32)
    for b in range(B):
        for i in range(L):
            one_res = []
            for j in range(S):
                t = int(stm[b, i, j])
                if t != -1:
                    if t != 0:
                        val = session[b, j - 1, t - 1]
                        out[b, i, j] = val
                        one_res.append(val)
                else:
                    one_res.append(out[b, i - 1, j].copy())
            stacked = np.stack(one_res, axis=0)
            one_avg = stacked[:S - 1].mean(axis=0)           # AvgPool2d((S-1,1)) -> [0][0]
            conv_state = conv[b, i] if i == 0 else conv[b, i - 1]
            z = np.concatenate([one_avg, conv_state], axis=0)
            out[b, i, 0] = np.maximum(z @ w + bias[0], 0.0)
    return out


if __name__ == "__main__":
    B, L, S, P, H = BATCH, MAX_CONV_LEN, STATE_NUM, MAX_SESSION_LEN, HIDDEN
    key = jax.random.PRNGKey(0)
    ku, kc, ks, kt, kz, kf, kw, kb = jax.random.split(key, 8)

    utterance_repre = jax.random.normal(ku, (B, L, H), jnp.float32)
    conversation_repre = jax.random.normal(kc, (B, L, H), jnp.float32)
    session_repre = jax.random.normal(ks, (B, S - 1, P, H), jnp.float32)

    # transition codes in {-1, 1..P}, with at most one 0 per (b, i) row so the
    # PyTorch pooling over one_res is well defined (>= S-1 appended rows).
    stm = jax.random.randint(kt, (B, L, S), minval=0, maxval=P + 1)
    stm = jnp.where(stm == 0, -1, stm)
    zero_col = jax.random.randint(kz, (B, L), 0, S)
    use_zero = jax.random.bernoulli(kf, 0.5, (B, L))
    col_iota = jnp.arange(S)[None, None, :]
    stm = jnp.where(use_zero[..., None] & (col_iota == zero_col[..., None]), 0, stm)
    stm = stm.astype(jnp.int32)

    # Deterministic Linear(2H -> H) parameters (stored as x @ W form, W: (2H, H)).
    w = jax.random.normal(kw, (2 * H, H), jnp.float32) * 0.1
    bias = jax.random.normal(kb, (1, H), jnp.float32) * 0.1

    fwd = jax.jit(state_matrix_encoder_forward, static_argnums=(4,))
    out = fwd(utterance_repre, conversation_repre, session_repre, stm, L, w, bias)
    out = jax.block_until_ready(out)

    ref = reference_forward(np.asarray(session_repre), np.asarray(conversation_repre),
                            np.asarray(stm), np.asarray(w), np.asarray(bias))
    np.testing.assert_allclose(np.asarray(out), ref, rtol=1e-4, atol=1e-4)

    print("KERNEL_OK")
</pallas_src>

<mosaic_0001>
module attributes {stable_mosaic.version = 11 : i64} {
  func.func @_state_matrix_kernel(%arg0: memref<32x64xf32, #tpu.memory_space<vmem>>, %arg1: memref<64x160xf32, #tpu.memory_space<vmem>>, %arg2: memref<17x64xf32, #tpu.memory_space<vmem>>, %arg3: memref<64x32xf32, #tpu.memory_space<vmem>>, %arg4: memref<16x160xf32, #tpu.memory_space<vmem>>) attributes {dimension_semantics = [], scalar_prefetch = 0 : i64, scratch_operands = 0 : i64, tpu.core_type = #tpu.core_type<tc>} {
    %c0 = arith.constant 0 : index
    %c0_0 = arith.constant 0 : index
    %0 = vector.load %arg3[%c0, %c0_0] : memref<64x32xf32, #tpu.memory_space<vmem>>, vector<64x32xf32>
    %1 = vector.extract_strided_slice %0 {offsets = [0, 0], sizes = [32, 32], strides = [1, 1]} : vector<64x32xf32> to vector<32x32xf32>
    %c0_1 = arith.constant 0 : index
    %c0_2 = arith.constant 0 : index
    %2 = vector.load %arg2[%c0_1, %c0_2] : memref<17x64xf32, #tpu.memory_space<vmem>>, vector<17x64xf32>
    %3 = vector.extract_strided_slice %2 {offsets = [0, 0], sizes = [16, 32], strides = [1, 1]} : vector<17x64xf32> to vector<16x32xf32>
    %4 = vector.extract_strided_slice %2 {offsets = [0, 32], sizes = [16, 32], strides = [1, 1]} : vector<17x64xf32> to vector<16x32xf32>
    %5 = vector.extract_strided_slice %2 {offsets = [16, 0], sizes = [1, 32], strides = [1, 1]} : vector<17x64xf32> to vector<1x32xf32>
    %c0_3 = arith.constant 0 : index
    %c0_4 = arith.constant 0 : index
    %6 = vector.load %arg0[%c0_3, %c0_4] : memref<32x64xf32, #tpu.memory_space<vmem>>, vector<32x64xf32>
    %c0_5 = arith.constant 0 : index
    %c0_6 = arith.constant 0 : index
    %7 = vector.load %arg1[%c0_5, %c0_6] : memref<64x160xf32, #tpu.memory_space<vmem>>, vector<64x160xf32>
    %cst = arith.constant dense<0.000000e+00> : vector<32x160xf32>
    %8 = tpu.matmul %6, %7, %cst {dimension_numbers = #tpu.dot_dimension_numbers<[1], [0], [0], [1], [0, 0, 1, 1], [], []>} : vector<32x64xf32>, vector<64x160xf32>, vector<32x160xf32> -> vector<32x160xf32>
    %9 = vector.extract_strided_slice %8 {offsets = [0, 0], sizes = [16, 128], strides = [1, 1]} : vector<32x160xf32> to vector<16x128xf32>
    %10 = vector.extract_strided_slice %8 {offsets = [16, 128], sizes = [16, 32], strides = [1, 1]} : vector<32x160xf32> to vector<16x32xf32>
    %11 = tpu.concatenate %10, %3 in 1 : vector<16x32xf32>, vector<16x32xf32> -> vector<16x64xf32>
    %cst_7 = arith.constant dense<0.000000e+00> : vector<16x32xf32>
    %12 = tpu.matmul %11, %0, %cst_7 {dimension_numbers = #tpu.dot_dimension_numbers<[1], [0], [0], [1], [0, 0, 1, 1], [], []>} : vector<16x64xf32>, vector<64x32xf32>, vector<16x32xf32> -> vector<16x32xf32>
    %13 = vector.broadcast %5 : vector<1x32xf32> to vector<16x32xf32>
    %14 = arith.addf %12, %13 : vector<16x32xf32>
    %15 = vector.shape_cast %14 : vector<16x32xf32> to vector<2x8x32xf32>
    %16 = vector.shape_cast %4 : vector<16x32xf32> to vector<2x8x32xf32>
    %cst_8 = arith.constant 0.000000e+00 : f32
    %17 = vector.broadcast %cst_8 : f32 to vector<2x32xf32>
    %cst_9 = arith.constant dense<0.000000e+00> : vector<2x32xf32>
    %18 = tpu.matmul %17, %1, %cst_9 {dimension_numbers = #tpu.dot_dimension_numbers<[1], [0], [0], [1], [0, 0, 1, 1], [], []>} : vector<2x32xf32>, vector<32x32xf32>, vector<2x32xf32> -> vector<2x32xf32>
    %19 = vector.extract_strided_slice %15 {offsets = [0, 0, 0], sizes = [2, 1, 32], strides = [1, 1, 1]} : vector<2x8x32xf32> to vector<2x1x32xf32>
    %20 = vector.shape_cast %19 : vector<2x1x32xf32> to vector<2x32xf32>
    %21 = vector.extract_strided_slice %16 {offsets = [0, 0, 0], sizes = [2, 1, 32], strides = [1, 1, 1]} : vector<2x8x32xf32> to vector<2x1x32xf32>
    %22 = vector.shape_cast %21 : vector<2x1x32xf32> to vector<2x32xf32>
    %23 = arith.mulf %22, %18 : vector<2x32xf32>
    %24 = arith.addf %20, %23 : vector<2x32xf32>
    %cst_10 = arith.constant 0.000000e+00 : f32
    %25 = vector.broadcast %cst_10 : f32 to vector<2x32xf32>
    %26 = arith.maximumf %24, %25 : vector<2x32xf32>
    %cst_11 = arith.constant dense<0.000000e+00> : vector<2x32xf32>
    %27 = tpu.matmul %26, %1, %cst_11 {dimension_numbers = #tpu.dot_dimension_numbers<[1], [0], [0], [1], [0, 0, 1, 1], [], []>} : vector<2x32xf32>, vector<32x32xf32>, vector<2x32xf32> -> vector<2x32xf32>
    %28 = vector.extract_strided_slice %15 {offsets = [0, 1, 0], sizes = [2, 1, 32], strides = [1, 1, 1]} : vector<2x8x32xf32> to vector<2x1x32xf32>
    %29 = vector.shape_cast %28 : vector<2x1x32xf32> to vector<2x32xf32>
    %30 = vector.extract_strided_slice %16 {offsets = [0, 1, 0], sizes = [2, 1, 32], strides = [1, 1, 1]} : vector<2x8x32xf32> to vector<2x1x32xf32>
    %31 = vector.shape_cast %30 : vector<2x1x32xf32> to vector<2x32xf32>
    %32 = arith.mulf %31, %27 : vector<2x32xf32>
    %33 = arith.addf %29, %32 : vector<2x32xf32>
    %cst_12 = arith.constant 0.000000e+00 : f32
    %34 = vector.broadcast %cst_12 : f32 to vector<2x32xf32>
    %35 = arith.maximumf %33, %34 : vector<2x32xf32>
    %cst_13 = arith.constant dense<0.000000e+00> : vector<2x32xf32>
    %36 = tpu.matmul %35, %1, %cst_13 {dimension_numbers = #tpu.dot_dimension_numbers<[1], [0], [0], [1], [0, 0, 1, 1], [], []>} : vector<2x32xf32>, vector<32x32xf32>, vector<2x32xf32> -> vector<2x32xf32>
    %37 = vector.extract_strided_slice %15 {offsets = [0, 2, 0], sizes = [2, 1, 32], strides = [1, 1, 1]} : vector<2x8x32xf32> to vector<2x1x32xf32>
    %38 = vector.shape_cast %37 : vector<2x1x32xf32> to vector<2x32xf32>
    %39 = vector.extract_strided_slice %16 {offsets = [0, 2, 0], sizes = [2, 1, 32], strides = [1, 1, 1]} : vector<2x8x32xf32> to vector<2x1x32xf32>
    %40 = vector.shape_cast %39 : vector<2x1x32xf32> to vector<2x32xf32>
    %41 = arith.mulf %40, %36 : vector<2x32xf32>
    %42 = arith.addf %38, %41 : vector<2x32xf32>
    %cst_14 = arith.constant 0.000000e+00 : f32
    %43 = vector.broadcast %cst_14 : f32 to vector<2x32xf32>
    %44 = arith.maximumf %42, %43 : vector<2x32xf32>
    %cst_15 = arith.constant dense<0.000000e+00> : vector<2x32xf32>
    %45 = tpu.matmul %44, %1, %cst_15 {dimension_numbers = #tpu.dot_dimension_numbers<[1], [0], [0], [1], [0, 0, 1, 1], [], []>} : vector<2x32xf32>, vector<32x32xf32>, vector<2x32xf32> -> vector<2x32xf32>
    %46 = vector.extract_strided_slice %15 {offsets = [0, 3, 0], sizes = [2, 1, 32], strides = [1, 1, 1]} : vector<2x8x32xf32> to vector<2x1x32xf32>
    %47 = vector.shape_cast %46 : vector<2x1x32xf32> to vector<2x32xf32>
    %48 = vector.extract_strided_slice %16 {offsets = [0, 3, 0], sizes = [2, 1, 32], strides = [1, 1, 1]} : vector<2x8x32xf32> to vector<2x1x32xf32>
    %49 = vector.shape_cast %48 : vector<2x1x32xf32> to vector<2x32xf32>
    %50 = arith.mulf %49, %45 : vector<2x32xf32>
    %51 = arith.addf %47, %50 : vector<2x32xf32>
    %cst_16 = arith.constant 0.000000e+00 : f32
    %52 = vector.broadcast %cst_16 : f32 to vector<2x32xf32>
    %53 = arith.maximumf %51, %52 : vector<2x32xf32>
    %cst_17 = arith.constant dense<0.000000e+00> : vector<2x32xf32>
    %54 = tpu.matmul %53, %1, %cst_17 {dimension_numbers = #tpu.dot_dimension_numbers<[1], [0], [0], [1], [0, 0, 1, 1], [], []>} : vector<2x32xf32>, vector<32x32xf32>, vector<2x32xf32> -> vector<2x32xf32>
    %55 = vector.extract_strided_slice %15 {offsets = [0, 4, 0], sizes = [2, 1, 32], strides = [1, 1, 1]} : vector<2x8x32xf32> to vector<2x1x32xf32>
    %56 = vector.shape_cast %55 : vector<2x1x32xf32> to vector<2x32xf32>
    %57 = vector.extract_strided_slice %16 {offsets = [0, 4, 0], sizes = [2, 1, 32], strides = [1, 1, 1]} : vector<2x8x32xf32> to vector<2x1x32xf32>
    %58 = vector.shape_cast %57 : vector<2x1x32xf32> to vector<2x32xf32>
    %59 = arith.mulf %58, %54 : vector<2x32xf32>
    %60 = arith.addf %56, %59 : vector<2x32xf32>
    %cst_18 = arith.constant 0.000000e+00 : f32
    %61 = vector.broadcast %cst_18 : f32 to vector<2x32xf32>
    %62 = arith.maximumf %60, %61 : vector<2x32xf32>
    %cst_19 = arith.constant dense<0.000000e+00> : vector<2x32xf32>
    %63 = tpu.matmul %62, %1, %cst_19 {dimension_numbers = #tpu.dot_dimension_numbers<[1], [0], [0], [1], [0, 0, 1, 1], [], []>} : vector<2x32xf32>, vector<32x32xf32>, vector<2x32xf32> -> vector<2x32xf32>
    %64 = vector.extract_strided_slice %15 {offsets = [0, 5, 0], sizes = [2, 1, 32], strides = [1, 1, 1]} : vector<2x8x32xf32> to vector<2x1x32xf32>
    %65 = vector.shape_cast %64 : vector<2x1x32xf32> to vector<2x32xf32>
    %66 = vector.extract_strided_slice %16 {offsets = [0, 5, 0], sizes = [2, 1, 32], strides = [1, 1, 1]} : vector<2x8x32xf32> to vector<2x1x32xf32>
    %67 = vector.shape_cast %66 : vector<2x1x32xf32> to vector<2x32xf32>
    %68 = arith.mulf %67, %63 : vector<2x32xf32>
    %69 = arith.addf %65, %68 : vector<2x32xf32>
    %cst_20 = arith.constant 0.000000e+00 : f32
    %70 = vector.broadcast %cst_20 : f32 to vector<2x32xf32>
    %71 = arith.maximumf %69, %70 : vector<2x32xf32>
    %cst_21 = arith.constant dense<0.000000e+00> : vector<2x32xf32>
    %72 = tpu.matmul %71, %1, %cst_21 {dimension_numbers = #tpu.dot_dimension_numbers<[1], [0], [0], [1], [0, 0, 1, 1], [], []>} : vector<2x32xf32>, vector<32x32xf32>, vector<2x32xf32> -> vector<2x32xf32>
    %73 = vector.extract_strided_slice %15 {offsets = [0, 6, 0], sizes = [2, 1, 32], strides = [1, 1, 1]} : vector<2x8x32xf32> to vector<2x1x32xf32>
    %74 = vector.shape_cast %73 : vector<2x1x32xf32> to vector<2x32xf32>
    %75 = vector.extract_strided_slice %16 {offsets = [0, 6, 0], sizes = [2, 1, 32], strides = [1, 1, 1]} : vector<2x8x32xf32> to vector<2x1x32xf32>
    %76 = vector.shape_cast %75 : vector<2x1x32xf32> to vector<2x32xf32>
    %77 = arith.mulf %76, %72 : vector<2x32xf32>
    %78 = arith.addf %74, %77 : vector<2x32xf32>
    %cst_22 = arith.constant 0.000000e+00 : f32
    %79 = vector.broadcast %cst_22 : f32 to vector<2x32xf32>
    %80 = arith.maximumf %78, %79 : vector<2x32xf32>
    %cst_23 = arith.constant dense<0.000000e+00> : vector<2x32xf32>
    %81 = tpu.matmul %80, %1, %cst_23 {dimension_numbers = #tpu.dot_dimension_numbers<[1], [0], [0], [1], [0, 0, 1, 1], [], []>} : vector<2x32xf32>, vector<32x32xf32>, vector<2x32xf32> -> vector<2x32xf32>
    %82 = vector.extract_strided_slice %15 {offsets = [0, 7, 0], sizes = [2, 1, 32], strides = [1, 1, 1]} : vector<2x8x32xf32> to vector<2x1x32xf32>
    %83 = vector.shape_cast %82 : vector<2x1x32xf32> to vector<2x32xf32>
    %84 = vector.extract_strided_slice %16 {offsets = [0, 7, 0], sizes = [2, 1, 32], strides = [1, 1, 1]} : vector<2x8x32xf32> to vector<2x1x32xf32>
    %85 = vector.shape_cast %84 : vector<2x1x32xf32> to vector<2x32xf32>
    %86 = arith.mulf %85, %81 : vector<2x32xf32>
    %87 = arith.addf %83, %86 : vector<2x32xf32>
    %cst_24 = arith.constant 0.000000e+00 : f32
    %88 = vector.broadcast %cst_24 : f32 to vector<2x32xf32>
    %89 = arith.maximumf %87, %88 : vector<2x32xf32>
    %90 = vector.shape_cast %26 : vector<2x32xf32> to vector<2x1x32xf32>
    %91 = vector.shape_cast %35 : vector<2x32xf32> to vector<2x1x32xf32>
    %92 = vector.shape_cast %44 : vector<2x32xf32> to vector<2x1x32xf32>
    %93 = vector.shape_cast %53 : vector<2x32xf32> to vector<2x1x32xf32>
    %94 = vector.shape_cast %62 : vector<2x32xf32> to vector<2x1x32xf32>
    %95 = vector.shape_cast %71 : vector<2x32xf32> to vector<2x1x32xf32>
    %96 = vector.shape_cast %80 : vector<2x32xf32> to vector<2x1x32xf32>
    %97 = vector.shape_cast %89 : vector<2x32xf32> to vector<2x1x32xf32>
    %98 = tpu.concatenate %90, %91, %92, %93, %94, %95, %96, %97 in 1 : vector<2x1x32xf32>, vector<2x1x32xf32>, vector<2x1x32xf32>, vector<2x1x32xf32>, vector<2x1x32xf32>, vector<2x1x32xf32>, vector<2x1x32xf32>, vector<2x1x32xf32> -> vector<2x8x32xf32>
    %99 = vector.shape_cast %98 : vector<2x8x32xf32> to vector<16x32xf32>
    %100 = tpu.concatenate %99, %9 in 1 : vector<16x32xf32>, vector<16x128xf32> -> vector<16x160xf32>
    %c0_25 = arith.constant 0 : index
    %c0_26 = arith.constant 0 : index
    %101 = vector.load %arg4[%c0_25, %c0_26] : memref<16x160xf32, #tpu.memory_space<vmem>>, vector<16x160xf32>
    tpu.vector_store %arg4[%c0_25, %c0_26], %100 {strides = array<i32>} : memref<16x160xf32, #tpu.memory_space<vmem>>, vector<16x160xf32>,
    return
  }
}

</mosaic_0001>

<bundles_post_ra>
// kernel: state_matrix_encoder_forward.1
= control target key start
LH: loop header
LB: loop body
LE: loop exit
PB: predicated region body
PF: predicated region fallthrough
CT: control target
= control target key end

     0   :  { %v1249_v3 = vmov 0.0   ;;  %s1250_s11 = smov 32   ;;  %vm48_vm0 = vcmask 523264   ;;  %vm1251_vm1 = vmmov 0   ;;  %vm154_vm2 = vcmask 261120   ;;  %s1608_s1 = inlined_call_operand.vmem [shape: f32[64,160], index: 1, kind: input, shape index: {}]   ;;  %s1609_s2 = inlined_call_operand.vmem [shape: f32[17,64], index: 2, kind: input, shape index: {}]   ;;  %s1610_s3 = inlined_call_operand.vmem [shape: f32[64,32], index: 3, kind: input, shape index: {}]   ;;  %s1611_s0 = inlined_call_operand.vmem [shape: f32[32,64], index: 0, kind: input, shape index: {}]   ;;  %s1612_s4 = inlined_call_operand.vmem [shape: f32[16,160], index: 4, kind: output, shape index: {}]  }
   0x1   :  { %v47_v0 = vld [vmem:[%s1608_s1 + $0x78] sm:$0xff]  ;;  %v46_v1 = vld [vmem:[%s1608_s1 + $0x70] sm:$0xff]  ;;  %v45_v2 = vld [vmem:[%s1608_s1 + $0x68] sm:$0xff]  ;;  %125 = vmatprep.mubr.f32.mxu0 %v1249_v3  ;;  %vm340_vm3 = vcmask 1041409   ;;  %vm1035_vm4 = vcmask 1040384   ;;  %vm1038_vm5 = vcmask 1041408  }
   0x2   :  { %77 = vmatprep.subr.mxu0 %v47_v0  ;;  %v44_v4 = vld [vmem:[%s1608_s1 + $0x60] sm:$0xff]  ;;  %v43_v5 = vld [vmem:[%s1608_s1 + $0x58] sm:$0xff]  ;;  %v42_v6 = vld [vmem:[%s1608_s1 + $0x50] sm:$0xff]  ;;  %vm1041_vm6 = vcmask 1042432   ;;  %vm1044_vm7 = vcmask 1043456   ;;  %vm1047_vm8 = vcmask 1044480  }
   0x3   :  { %78 = vmatpush1.msra.mxu0 %v46_v1  ;;  %v41_v7 = vld [vmem:[%s1608_s1 + $0x48] sm:$0xff]  ;;  %v40_v8 = vld [vmem:[%s1608_s1 + $0x40] sm:$0xff]  ;;  %v39_v9 = vld [vmem:[%s1608_s1 + $0x38] sm:$0xff]  ;;  %vm1050_vm9 = vcmask 1045504   ;;  %vm1053_vm10 = vcmask 1046528  }
   0x4   :  { %79 = vmatprep.subr.mxu0 %v45_v2  ;;  %v1309_v10 = vld [vmem:[%s1609_s2] sm:$0xff]  ;;  %v38_v11 = vld [vmem:[%s1608_s1 + $0x30] sm:$0xff]  ;;  %v24_v12 = vld [vmem:[%s1610_s3 + $0x38] sm:$0xff] }
   0x5   :  { %80 = vmatpush1.msra.mxu0 %v44_v4  ;;  %148 = vrot.lane.b32.xlu0 %v1309_v10, %s1250_s11  ;;  %v37_v13 = vld [vmem:[%s1608_s1 + $0x28] sm:$0xff]  ;;  %v36_v15 = vld [vmem:[%s1608_s1 + $0x20] sm:$0xff]  ;;  %v35_v16 = vld [vmem:[%s1608_s1 + $0x18] sm:$0xff] }
   0x6   :  { %81 = vmatprep.subr.mxu0 %v43_v5  ;;  %v1325_v14 = vld [vmem:[%s1609_s2 + $0x8] sm:$0xff]  ;;  %1138 = vmatprep.subr.mxu1 %v24_v12  ;;  %v34_v17 = vld [vmem:[%s1608_s1 + $0x10] sm:$0xff]  ;;  %v32_v19 = vld [vmem:[%s1608_s1] sm:$0xff] }
   0x7   :  { %82 = vmatpush1.msra.mxu0 %v42_v6  ;;  %1139 = vmatpush3.msra.mxu1 %v24_v12  ;;  %v33_v18 = vld [vmem:[%s1608_s1 + $0x8] sm:$0xff]  ;;  %v28_v20 = vld [vmem:[%s1611_s0] sm:$0xff]  ;;  %v30_v22 = vld [vmem:[%s1611_s0 + $0x10] sm:$0xff] }
   0x8   :  { %83 = vmatprep.subr.mxu0 %v41_v7  ;;  %v29_v21 = vld [vmem:[%s1611_s0 + $0x8] sm:$0xff]  ;;  %v31_v23 = vld [vmem:[%s1611_s0 + $0x18] sm:$0xff]  ;;  %v23_v24 = vld [vmem:[%s1610_s3 + $0x30] sm:$0xff] }
   0x9   :  { %84 = vmatpush1.msra.mxu0 %v40_v8  ;;  %150 = vrot.lane.b32.xlu0 %v1325_v14, %s1250_s11  ;;  %v22_v25 = vld [vmem:[%s1610_s3 + $0x28] sm:$0xff]  ;;  %v21_v26 = vld [vmem:[%s1610_s3 + $0x20] sm:$0xff]  ;;  %v1376_v27 = vld [vmem:[%s1610_s3 + $0x18] sm:$0xff] }
   0xa   :  { %85 = vmatprep.subr.mxu0 %v39_v9  ;;  %1140 = vmatprep.subr.mxu1 %v23_v24  ;;  %v1384_v28 = vld [vmem:[%s1610_s3 + $0x10] sm:$0xff]  ;;  %v1393_v29 = vld [vmem:[%s1610_s3 + $0x8] sm:$0xff]  ;;  %v1402_v30 = vld [vmem:[%s1610_s3] sm:$0xff]  ;;  %s1252_s3 = smov 96  }
   0xb   :  { %86 = vmatpush1.msra.mxu0 %v38_v11  ;;  %1141 = vmatpush3.msra.mxu1 %v23_v24  ;;  %v1078_v52 = vld [vmem:[%s1609_s2 + $0x10] ss:$0 sm:$0xff] }
   0xc   :  { %87 = vmatprep.subr.mxu0 %v37_v13  ;;  %1142 = vmatprep.subr.mxu1 %v22_v25 }
   0xd   :  { %88 = vmatpush1.msra.mxu0 %v36_v15  ;;  %1143 = vmatpush3.msra.mxu1 %v22_v25 }
   0xe   :  { %89 = vmatprep.subr.mxu0 %v35_v16  ;;  %1144 = vmatprep.subr.mxu1 %v21_v26 }
   0xf   :  { %90 = vmatpush1.msra.mxu0 %v34_v17  ;;  %1145 = vmatpush3.msra.mxu1 %v21_v26 }
  0x10   :  { %91 = vmatprep.subr.mxu0 %v33_v18  ;;  %1146 = vmatprep.subr.mxu1 %v1376_v27 }
  0x11   :  { %92 = vmatpush1.msra.mxu0 %v32_v19  ;;  %1147 = vmatpush3.msra.mxu1 %v1376_v27 }
  0x12   :  { %1074 = vmatmul.mubr.msk.f32.vlgmr.msra.gmra.mxu0 %vm48_vm0, %v28_v20  ;;  %1168 = vmatprep.subr.mxu0 %v1249_v3 }
  0x13   :  { %130 = vmatprep.mubr.f32.mxu0 %v1249_v3  ;;  %1169 = vmatpush3.msra.mxu0 %v1376_v27 }
  0x14   :  { %1170 = vmatprep.subr.mxu0 %v1249_v3  ;;  %1148 = vmatprep.subr.mxu1 %v1384_v28 }
  0x15   :  { %1171 = vmatpush3.msra.mxu0 %v1384_v28  ;;  %1149 = vmatpush3.msra.mxu1 %v1384_v28 }
  0x16   :  { %1075 = vmatmul.mubr.msk.f32.gmra.mxu0 %vm48_vm0, %v29_v21  ;;  %1172 = vmatprep.subr.mxu0 %v1249_v3 }
  0x17   :  { %135 = vmatprep.mubr.f32.mxu0 %v1249_v3  ;;  %1150 = vmatprep.subr.mxu1 %v1393_v29 }
  0x18   :  { %1173 = vmatpush3.msra.mxu0 %v1393_v29  ;;  %1151 = vmatpush3.msra.mxu1 %v1393_v29 }
  0x19   :  { %1174 = vmatprep.subr.mxu0 %v1249_v3  ;;  %1152 = vmatprep.subr.mxu1 %v1402_v30 }
  0x1a   :  { %1076 = vmatmul.mubr.msk.f32.gmra.mxu0 %vm48_vm0, %v30_v22  ;;  %1153 = vmatpush3.msra.mxu1 %v1402_v30 }
  0x1b   :  { %140 = vmatprep.mubr.f32.mxu0 %v1249_v3  ;;  %1175 = vmatpush3.msra.mxu0 %v1402_v30 }
  0x1c   :  { %1190 = vmatprep.subr.mxu0 %v1249_v3  ;;  %1157 = vmatprep.subr.mxu1 %v1249_v3 }
  0x1e   :  { %1077 = vmatmul.mubr.msk.f32.gmra.mxu0 %vm48_vm0, %v31_v23 }
  0x1f   :  { %1176 = vmatprep.mubr.msk.f32.mxu0 %vm1251_vm1, %v1249_v3 }
  0x77   :  { %v149_v35 = vpop.permute.xlu0 %148 }
  0x7b   :  { %v151_v40 = vpop.permute.xlu0 %150 }
  0xd2   :  { %v1412_v31 = vpop.f32.mrf.mxu0 }
  0xd4   :  { %v129_v32 = vpop.f32.mrf.mxu0 }
  0xd6   :  { %v1414_v33 = vpop.f32.mrf.mxu0 }
  0xd8   :  { %v134_v34 = vpop.f32.mrf.mxu0 }
  0xda   :  { %v137_v36 = vpop.f32.mrf.mxu0 }
  0xdc   :  { %v138_v37 = vpop.f32.mrf.mxu0 }
  0xdd   :  { %v155_v38 = vsel %vm154_vm2, %v138_v37, %v149_v35 }
  0xde   :  { %v142_v39 = vpop.f32.mrf.mxu0  ;;  %1154 = vmatprep.mubr.msk.f32.mxu1 %vm48_vm0, %v155_v38 }
  0xe0   :  { %v143_v41 = vpop.f32.mrf.mxu0 }
  0xe1   :  { %v156_v42 = vsel %vm154_vm2, %v143_v41, %v151_v40 }
  0xe2   :  { %1155 = vmatmul.mubr.msk.f32.vlgmr.msra.gmra.mxu1 %vm48_vm0, %v156_v42 }
  0xe3   :  { %1158 = vmatpush3.msra.mxu1 %v1376_v27  ;;  %1165 = vmatprep.mubr.msk.f32.mxu1 %vm1251_vm1, %v1249_v3 }
  0xe4   :  { %1159 = vmatprep.subr.mxu1 %v1249_v3 }
  0xe5   :  { %1160 = vmatpush3.msra.mxu1 %v1384_v28 }
  0xe6   :  { %1161 = vmatprep.subr.mxu1 %v1249_v3 }
  0xe7   :  { %1162 = vmatpush3.msra.mxu1 %v1393_v29 }
  0xe8   :  { %1163 = vmatprep.subr.mxu1 %v1249_v3 }
  0xe9   :  { %1164 = vmatpush3.msra.mxu1 %v1402_v30 }
  0xea   :  { %1166 = vmatmul.mubr.f32.vlgmr.msra.gmra.mxu1 %v1249_v3  ;;  %1179 = vmatprep.subr.mxu1 %v1249_v3 }
  0xeb   :  { %1180 = vmatpush3.msra.mxu1 %v1376_v27  ;;  %1187 = vmatprep.mubr.msk.f32.mxu1 %vm1251_vm1, %v1249_v3 }
  0xec   :  { %1181 = vmatprep.subr.mxu1 %v1249_v3 }
  0xed   :  { %1182 = vmatpush3.msra.mxu1 %v1384_v28 }
  0xee   :  { %1183 = vmatprep.subr.mxu1 %v1249_v3 }
  0xef   :  { %1184 = vmatpush3.msra.mxu1 %v1393_v29 }
  0xf0   :  { %1185 = vmatprep.subr.mxu1 %v1249_v3 }
  0xf1   :  { %1186 = vmatpush3.msra.mxu1 %v1402_v30 }
  0xf2   :  { %1201 = vmatprep.subr.mxu1 %v1249_v3 }
 0x1a2   :  { %v1156_v43 = vpop.f32.mrf.mxu1 }
 0x1a3   :  { %v1450_v53 = vadd.f32 %v1156_v43, %v1078_v52 }
 0x1a4   :  { %v233_v44 = vpop.f32.mrf.mxu1 }
 0x1a5   :  { %v1455_v56 = vadd.f32 %v1078_v52, %v233_v44 }
 0x1aa   :  { %v311_v45 = vpop.f32.mrf.mxu1 }
 0x1ab   :  { %v316_v46 = vrot.slane %v311_v45, 1 }
 0x1ac   :  { %v1167_v47 = vpop.f32.mrf.mxu1 }
 0x1ad   :  { %319 = vrot.lane.b32.xlu1 %v316_v46, %s1250_s11 }
 0x1b1   :  { %317 = vrot.lane.b32.xlu1 %v311_v45, %s1250_s11 }
 0x21f   :  { %v320_v48 = vpop.permute.xlu1 %319 }
 0x220   :  { %v324_v49 = vmul.f32 %v320_v48, %v1325_v14 }
 0x222   :  { %329 = vrot.lane.b32.xlu0 %v324_v49, %s1252_s3 }
 0x223   :  { %v318_v50 = vpop.permute.xlu1 %317 }
 0x224   :  { %v323_v51 = vmul.f32 %v318_v50, %v1309_v10 }
 0x226   :  { %327 = vrot.lane.b32.xlu1 %v323_v51, %s1252_s3 }
 0x294   :  { %v330_v54 = vpop.permute.xlu0 %329 }
 0x295   :  { %v1453_v55 = vadd.f32 %v330_v54, %v1450_v53 }
 0x297   :  { %v336_v57 = vmax.f32 %v1453_v55, 0.0 }
 0x298   :  { %v328_v58 = vpop.permute.xlu1 %327 }
 0x299   :  { %v1459_v59 = vadd.f32 %v328_v58, %v1455_v56  ;;  %v339_v60 = vrot.slane %v336_v57, 7 }
 0x29b   :  { %v335_v61 = vmax.f32 %v1459_v59, 0.0 }
 0x29d   :  { %v341_v62 = vsel %vm340_vm3, %v339_v60, %v335_v61 }
 0x29e   :  { %1177 = vmatmul.mubr.msk.f32.vlgmr.msra.gmra.mxu0 %vm154_vm2, %v341_v62 }
 0x29f   :  { %1191 = vmatpush3.msra.mxu0 %v1376_v27  ;;  %1198 = vmatprep.mubr.msk.f32.mxu0 %vm1251_vm1, %v1249_v3 }
 0x2a0   :  { %1192 = vmatprep.subr.mxu0 %v1249_v3 }
 0x2a1   :  { %1193 = vmatpush3.msra.mxu0 %v1384_v28 }
 0x2a2   :  { %1194 = vmatprep.subr.mxu0 %v1249_v3 }
 0x2a3   :  { %1195 = vmatpush3.msra.mxu0 %v1393_v29 }
 0x2a4   :  { %1196 = vmatprep.subr.mxu0 %v1249_v3 }
 0x2a5   :  { %1197 = vmatpush3.msra.mxu0 %v1402_v30 }
 0x2a6   :  { %1212 = vmatprep.subr.mxu0 %v1249_v3 }
 0x35e   :  { %v410_v63 = vpop.f32.mrf.mxu0 }
 0x35f   :  { %v415_v0 = vrot.slane %v410_v63, 7  ;;  %418 = vrot.lane.b32.xlu1 %v410_v63, %s1250_s11 }
 0x360   :  { %v1178_v1 = vpop.f32.mrf.mxu0 }
 0x361   :  { %416 = vrot.lane.b32.xlu0 %v415_v0, %s1250_s11 }
 0x3d1   :  { %v419_v2 = vpop.permute.xlu1 %418 }
 0x3d2   :  { %v423_v4 = vmul.f32 %v419_v2, %v1325_v14 }
 0x3d3   :  { %v417_v5 = vpop.permute.xlu0 %416 }
 0x3d4   :  { %v422_v6 = vmul.f32 %v417_v5, %v1309_v10  ;;  %428 = vrot.lane.b32.xlu1 %v423_v4, %s1252_s3 }
 0x3d6   :  { %426 = vrot.lane.b32.xlu0 %v422_v6, %s1252_s3 }
 0x446   :  { %v429_v7 = vpop.permute.xlu1 %428 }
 0x447   :  { %v433_v9 = vadd.f32 %v429_v7, %v1450_v53 }
 0x448   :  { %v427_v8 = vpop.permute.xlu0 %426 }
 0x449   :  { %v432_v11 = vadd.f32 %v427_v8, %v1455_v56  ;;  %v435_v13 = vmax.f32 %v433_v9, 0.0 }
 0x44b   :  { %v434_v12 = vmax.f32 %v432_v11, 0.0  ;;  %v1037_v37 = vsel %vm1035_vm4, %v336_v57, %v435_v13 }
 0x44d   :  { %v438_v15 = vrot.slane %v434_v12, 1  ;;  %v1036_v38 = vsel %vm1035_vm4, %v335_v61, %v434_v12 }
 0x44f   :  { %v439_v16 = vsel %vm340_vm3, %v435_v13, %v438_v15 }
 0x450   :  { %1188 = vmatmul.mubr.msk.f32.vlgmr.msra.gmra.mxu1 %vm154_vm2, %v439_v16 }
 0x451   :  { %1202 = vmatpush3.msra.mxu1 %v1376_v27  ;;  %1209 = vmatprep.mubr.msk.f32.mxu1 %vm1251_vm1, %v1249_v3 }
 0x452   :  { %1203 = vmatprep.subr.mxu1 %v1249_v3 }
 0x453   :  { %1204 = vmatpush3.msra.mxu1 %v1384_v28 }
 0x454   :  { %1205 = vmatprep.subr.mxu1 %v1249_v3 }
 0x455   :  { %1206 = vmatpush3.msra.mxu1 %v1393_v29 }
 0x456   :  { %1207 = vmatprep.subr.mxu1 %v1249_v3 }
 0x457   :  { %1208 = vmatpush3.msra.mxu1 %v1402_v30 }
 0x458   :  { %1223 = vmatprep.subr.mxu1 %v1249_v3 }
 0x510   :  { %v508_v17 = vpop.f32.mrf.mxu1 }
 0x511   :  { %v513_v18 = vrot.slane %v508_v17, 6  ;;  %v514_v19 = vrot.slane %v508_v17, 7 }
 0x512   :  { %v1189_v20 = vpop.f32.mrf.mxu1 }
 0x513   :  { %517 = vrot.lane.b32.xlu1 %v514_v19, %s1250_s11  ;;  %515 = vrot.lane.b32.xlu0 %v513_v18, %s1250_s11 }
 0x585   :  { %v518_v21 = vpop.permute.xlu1 %517  ;;  %v516_v22 = vpop.permute.xlu0 %515 }
 0x586   :  { %v522_v23 = vmul.f32 %v518_v21, %v1325_v14  ;;  %v521_v24 = vmul.f32 %v516_v22, %v1309_v10 }
 0x588   :  { %527 = vrot.lane.b32.xlu1 %v522_v23, %s1252_s3  ;;  %525 = vrot.lane.b32.xlu0 %v521_v24, %s1252_s3 }
 0x5fa   :  { %v528_v25 = vpop.permute.xlu1 %527  ;;  %v526_v26 = vpop.permute.xlu0 %525 }
 0x5fb   :  { %v532_v32 = vadd.f32 %v528_v25, %v1450_v53  ;;  %v531_v34 = vadd.f32 %v526_v26, %v1455_v56 }
 0x5fd   :  { %v534_v35 = vmax.f32 %v532_v32, 0.0  ;;  %v533_v36 = vmax.f32 %v531_v34, 0.0 }
 0x5ff   :  { %v538_v39 = vrot.slane %v534_v35, 1  ;;  %v1040_v40 = vsel %vm1038_vm5, %v1037_v37, %v534_v35  ;;  %v537_v41 = vrot.slane %v533_v36, 2  ;;  %v1039_v42 = vsel %vm1038_vm5, %v1036_v38, %v533_v36 }
 0x601   :  { %v539_v43 = vsel %vm340_vm3, %v538_v39, %v537_v41 }
 0x602   :  { %1199 = vmatmul.mubr.msk.f32.vlgmr.msra.gmra.mxu0 %vm154_vm2, %v539_v43 }
 0x603   :  { %1213 = vmatpush3.msra.mxu0 %v1376_v27  ;;  %1220 = vmatprep.mubr.msk.f32.mxu0 %vm1251_vm1, %v1249_v3 }
 0x604   :  { %1214 = vmatprep.subr.mxu0 %v1249_v3 }
 0x605   :  { %1215 = vmatpush3.msra.mxu0 %v1384_v28 }
 0x606   :  { %1216 = vmatprep.subr.mxu0 %v1249_v3 }
 0x607   :  { %1217 = vmatpush3.msra.mxu0 %v1393_v29 }
 0x608   :  { %1218 = vmatprep.subr.mxu0 %v1249_v3 }
 0x609   :  { %1219 = vmatpush3.msra.mxu0 %v1402_v30 }
 0x60a   :  { %1234 = vmatprep.subr.mxu0 %v1249_v3 }
 0x6c2   :  { %v608_v44 = vpop.f32.mrf.mxu0 }
 0x6c3   :  { %v613_v45 = vrot.slane %v608_v44, 5  ;;  %v614_v46 = vrot.slane %v608_v44, 6 }
 0x6c4   :  { %v1200_v47 = vpop.f32.mrf.mxu0 }
 0x6c5   :  { %617 = vrot.lane.b32.xlu1 %v614_v46, %s1250_s11  ;;  %615 = vrot.lane.b32.xlu0 %v613_v45, %s1250_s11 }
 0x737   :  { %v618_v48 = vpop.permute.xlu1 %617  ;;  %v616_v49 = vpop.permute.xlu0 %615 }
 0x738   :  { %v622_v50 = vmul.f32 %v618_v48, %v1325_v14  ;;  %v621_v51 = vmul.f32 %v616_v49, %v1309_v10 }
 0x73a   :  { %627 = vrot.lane.b32.xlu1 %v622_v50, %s1252_s3  ;;  %625 = vrot.lane.b32.xlu0 %v621_v51, %s1252_s3 }
 0x7ac   :  { %v628_v52 = vpop.permute.xlu1 %627  ;;  %v626_v54 = vpop.permute.xlu0 %625 }
 0x7ad   :  { %v632_v55 = vadd.f32 %v628_v52, %v1450_v53  ;;  %v631_v57 = vadd.f32 %v626_v54, %v1455_v56 }
 0x7af   :  { %v634_v58 = vmax.f32 %v632_v55, 0.0  ;;  %v633_v59 = vmax.f32 %v631_v57, 0.0 }
 0x7b1   :  { %v638_v60 = vrot.slane %v634_v58, 2  ;;  %v1043_v61 = vsel %vm1041_vm6, %v1040_v40, %v634_v58  ;;  %v637_v62 = vrot.slane %v633_v59, 3  ;;  %v1042_v63 = vsel %vm1041_vm6, %v1039_v42, %v633_v59 }
 0x7b3   :  { %v639_v0 = vsel %vm340_vm3, %v638_v60, %v637_v62 }
 0x7b4   :  { %1210 = vmatmul.mubr.msk.f32.vlgmr.msra.gmra.mxu1 %vm154_vm2, %v639_v0 }
 0x7b5   :  { %1224 = vmatpush3.msra.mxu1 %v1376_v27  ;;  %1231 = vmatprep.mubr.msk.f32.mxu1 %vm1251_vm1, %v1249_v3 }
 0x7b6   :  { %1225 = vmatprep.subr.mxu1 %v1249_v3 }
 0x7b7   :  { %1226 = vmatpush3.msra.mxu1 %v1384_v28 }
 0x7b8   :  { %1227 = vmatprep.subr.mxu1 %v1249_v3 }
 0x7b9   :  { %1228 = vmatpush3.msra.mxu1 %v1393_v29 }
 0x7ba   :  { %1229 = vmatprep.subr.mxu1 %v1249_v3 }
 0x7bb   :  { %1230 = vmatpush3.msra.mxu1 %v1402_v30 }
 0x874   :  { %v708_v1 = vpop.f32.mrf.mxu1 }
 0x875   :  { %v713_v2 = vrot.slane %v708_v1, 4  ;;  %v714_v4 = vrot.slane %v708_v1, 5 }
 0x876   :  { %v1211_v5 = vpop.f32.mrf.mxu1 }
 0x877   :  { %717 = vrot.lane.b32.xlu1 %v714_v4, %s1250_s11  ;;  %715 = vrot.lane.b32.xlu0 %v713_v2, %s1250_s11 }
 0x8e9   :  { %v718_v6 = vpop.permute.xlu1 %717  ;;  %v716_v7 = vpop.permute.xlu0 %715 }
 0x8ea   :  { %v722_v8 = vmul.f32 %v718_v6, %v1325_v14  ;;  %v721_v9 = vmul.f32 %v716_v7, %v1309_v10 }
 0x8ec   :  { %727 = vrot.lane.b32.xlu1 %v722_v8, %s1252_s3  ;;  %725 = vrot.lane.b32.xlu0 %v721_v9, %s1252_s3 }
 0x95e   :  { %v728_v11 = vpop.permute.xlu1 %727  ;;  %v726_v12 = vpop.permute.xlu0 %725 }
 0x95f   :  { %v732_v13 = vadd.f32 %v728_v11, %v1450_v53  ;;  %v731_v15 = vadd.f32 %v726_v12, %v1455_v56 }
 0x961   :  { %v734_v16 = vmax.f32 %v732_v13, 0.0  ;;  %v733_v17 = vmax.f32 %v731_v15, 0.0 }
 0x963   :  { %v738_v18 = vrot.slane %v734_v16, 3  ;;  %v1046_v19 = vsel %vm1044_vm7, %v1043_v61, %v734_v16  ;;  %v737_v20 = vrot.slane %v733_v17, 4  ;;  %v1045_v21 = vsel %vm1044_vm7, %v1042_v63, %v733_v17 }
 0x965   :  { %v739_v22 = vsel %vm340_vm3, %v738_v18, %v737_v20 }
 0x966   :  { %1221 = vmatmul.mubr.msk.f32.vlgmr.msra.gmra.mxu0 %vm154_vm2, %v739_v22 }
 0x967   :  { %1235 = vmatpush3.msra.mxu0 %v1376_v27  ;;  %1242 = vmatprep.mubr.msk.f32.mxu0 %vm1251_vm1, %v1249_v3 }
 0x968   :  { %1236 = vmatprep.subr.mxu0 %v1249_v3 }
 0x969   :  { %1237 = vmatpush3.msra.mxu0 %v1384_v28 }
 0x96a   :  { %1238 = vmatprep.subr.mxu0 %v1249_v3 }
 0x96b   :  { %1239 = vmatpush3.msra.mxu0 %v1393_v29 }
 0x96c   :  { %1240 = vmatprep.subr.mxu0 %v1249_v3 }
 0x96d   :  { %1241 = vmatpush3.msra.mxu0 %v1402_v30 }
 0xa26   :  { %v808_v23 = vpop.f32.mrf.mxu0 }
 0xa27   :  { %v813_v24 = vrot.slane %v808_v23, 3  ;;  %v814_v25 = vrot.slane %v808_v23, 4 }
 0xa28   :  { %v1222_v26 = vpop.f32.mrf.mxu0 }
 0xa29   :  { %817 = vrot.lane.b32.xlu1 %v814_v25, %s1250_s11  ;;  %815 = vrot.lane.b32.xlu0 %v813_v24, %s1250_s11 }
 0xa9b   :  { %v818_v27 = vpop.permute.xlu1 %817  ;;  %v816_v32 = vpop.permute.xlu0 %815 }
 0xa9c   :  { %v822_v28 = vmul.f32 %v818_v27, %v1325_v14  ;;  %v821_v34 = vmul.f32 %v816_v32, %v1309_v10 }
 0xa9e   :  { %827 = vrot.lane.b32.xlu1 %v822_v28, %s1252_s3  ;;  %825 = vrot.lane.b32.xlu0 %v821_v34, %s1252_s3 }
 0xb10   :  { %v828_v3 = vpop.permute.xlu1 %827  ;;  %v826_v29 = vpop.permute.xlu0 %825 }
 0xb11   :  { %v832_v30 = vadd.f32 %v828_v3, %v1450_v53  ;;  %v831_v35 = vadd.f32 %v826_v29, %v1455_v56 }
 0xb13   :  { %v834_v36 = vmax.f32 %v832_v30, 0.0  ;;  %v833_v37 = vmax.f32 %v831_v35, 0.0 }
 0xb15   :  { %v838_v38 = vrot.slane %v834_v36, 4  ;;  %v1049_v39 = vsel %vm1047_vm8, %v1046_v19, %v834_v36  ;;  %v837_v40 = vrot.slane %v833_v37, 5  ;;  %v1048_v41 = vsel %vm1047_vm8, %v1045_v21, %v833_v37 }
 0xb17   :  { %v839_v42 = vsel %vm340_vm3, %v838_v38, %v837_v40 }
 0xb18   :  { %1232 = vmatmul.mubr.msk.f32.vlgmr.msra.gmra.mxu1 %vm154_vm2, %v839_v42 }
 0xbd8   :  { %v908_v43 = vpop.f32.mrf.mxu1 }
 0xbd9   :  { %v913_v44 = vrot.slane %v908_v43, 2  ;;  %v914_v45 = vrot.slane %v908_v43, 3 }
 0xbda   :  { %v1233_v46 = vpop.f32.mrf.mxu1 }
 0xbdb   :  { %917 = vrot.lane.b32.xlu1 %v914_v45, %s1250_s11  ;;  %915 = vrot.lane.b32.xlu0 %v913_v44, %s1250_s11 }
 0xc4d   :  { %v918_v47 = vpop.permute.xlu1 %917  ;;  %v916_v48 = vpop.permute.xlu0 %915 }
 0xc4e   :  { %v922_v49 = vmul.f32 %v918_v47, %v1325_v14  ;;  %v921_v50 = vmul.f32 %v916_v48, %v1309_v10 }
 0xc50   :  { %927 = vrot.lane.b32.xlu1 %v922_v49, %s1252_s3  ;;  %925 = vrot.lane.b32.xlu0 %v921_v50, %s1252_s3 }
 0xcc2   :  { %v928_v51 = vpop.permute.xlu1 %927  ;;  %v926_v52 = vpop.permute.xlu0 %925 }
 0xcc3   :  { %v932_v54 = vadd.f32 %v928_v51, %v1450_v53  ;;  %v931_v55 = vadd.f32 %v926_v52, %v1455_v56 }
 0xcc5   :  { %v934_v57 = vmax.f32 %v932_v54, 0.0  ;;  %v933_v58 = vmax.f32 %v931_v55, 0.0 }
 0xcc7   :  { %v938_v59 = vrot.slane %v934_v57, 5  ;;  %v1052_v60 = vsel %vm1050_vm9, %v1049_v39, %v934_v57  ;;  %v937_v61 = vrot.slane %v933_v58, 6  ;;  %v1051_v62 = vsel %vm1050_vm9, %v1048_v41, %v933_v58 }
 0xcc9   :  { %v939_v63 = vsel %vm340_vm3, %v938_v59, %v937_v61 }
 0xcca   :  { %1243 = vmatmul.mubr.msk.f32.vlgmr.msra.gmra.mxu0 %vm154_vm2, %v939_v63 }
 0xd8a   :  { %v1008_v0 = vpop.f32.mrf.mxu0 }
 0xd8b   :  { %v1013_v1 = vrot.slane %v1008_v0, 1  ;;  %v1014_v2 = vrot.slane %v1008_v0, 2 }
 0xd8c   :  { %v1244_v4 = vpop.f32.mrf.mxu0 }
 0xd8d   :  { %1017 = vrot.lane.b32.xlu1 %v1014_v2, %s1250_s11  ;;  %1015 = vrot.lane.b32.xlu0 %v1013_v1, %s1250_s11 }
 0xdff   :  { %v1018_v5 = vpop.permute.xlu1 %1017  ;;  %v1016_v6 = vpop.permute.xlu0 %1015 }
 0xe00   :  { %v1022_v7 = vmul.f32 %v1018_v5, %v1325_v14  ;;  %v1021_v8 = vmul.f32 %v1016_v6, %v1309_v10 }
 0xe02   :  { %1027 = vrot.lane.b32.xlu1 %v1022_v7, %s1252_s3  ;;  %1025 = vrot.lane.b32.xlu0 %v1021_v8, %s1252_s3 }
 0xe06   :  { %1060 = vrot.lane.b32.xlu1 %v1414_v33, %s1250_s11  ;;  %1058 = vrot.lane.b32.xlu0 %v1412_v31, %s1250_s11 }
 0xe74   :  { %v1028_v9 = vpop.permute.xlu1 %1027  ;;  %v1026_v11 = vpop.permute.xlu0 %1025 }
 0xe75   :  { %v1032_v12 = vadd.f32 %v1028_v9, %v1450_v53  ;;  %v1031_v13 = vadd.f32 %v1026_v11, %v1455_v56 }
 0xe77   :  { %v1034_v14 = vmax.f32 %v1032_v12, 0.0  ;;  %v1033_v15 = vmax.f32 %v1031_v13, 0.0 }
 0xe78   :  { %v1061_v10 = vpop.permute.xlu1 %1060  ;;  %v1059_v16 = vpop.permute.xlu0 %1058 }
 0xe79   :  { %v1055_v17 = vsel %vm1053_vm10, %v1052_v60, %v1034_v14  ;;  %1069 = vst.msk [vmem:[%s1612_s4 + $0x18] sm:$0xff] %vm154_vm2, %v1061_v10  ;;  %v1054_v33 = vsel %vm1053_vm10, %v1051_v62, %v1033_v15  ;;  %1067 = vst.msk [vmem:[%s1612_s4 + $0x8] sm:$0xff] %vm154_vm2, %v1059_v16 }
 0xe7a   :  { %v1065_v31 = vsel %vm154_vm2, %v1055_v17, %v1061_v10  ;;  %v1064_v53 = vsel %vm154_vm2, %v1054_v33, %v1059_v16 }
 0xe7b   :  { %1068 = vst [vmem:[%s1612_s4 + $0x10] sm:$0xff] %v1065_v31  ;;  %1066 = vst [vmem:[%s1612_s4] sm:$0xff] %v1064_v53 }

</bundles_post_ra>
